<compile_context>
chip_gen: v5e
topology: v5e:2x2
jax: 0.10.0
libtpu: 0.0.40
codegen_flags: <defaults>
</compile_context>

<pallas_src>
import functools

import numpy as np
import jax
import jax.numpy as jnp
from jax.experimental import pallas as pl
from jax.experimental.pallas import tpu as pltpu


def _round_up(x, m):
    return ((x + m - 1) // m) * m


def _focal_kernel(logit_ref, target_ref, alpha_ref, out_ref, *, gamma, n_total, tn):
    i = pl.program_id(0)

    x = logit_ref[...].astype(jnp.float32)      # (C, TN)  classes x samples
    tgt = target_ref[...]                        # (1, TN)  int32
    alpha = alpha_ref[...]                       # (C, 1)   f32

    # numerically-stable log-softmax over the class (sublane) axis
    m = jnp.max(x, axis=0, keepdims=True)                       # (1, TN)
    z = x - m
    lse = jnp.log(jnp.sum(jnp.exp(z), axis=0, keepdims=True))   # (1, TN)
    logsm = z - lse                                             # (C, TN)

    # one-hot select of the target class for every sample (lane)
    cls = jax.lax.broadcasted_iota(jnp.int32, x.shape, 0)       # (C, TN)
    onehot = (cls == tgt).astype(jnp.float32)                   # (C, TN)

    logpt = jnp.sum(logsm * onehot, axis=0, keepdims=True)      # (1, TN)
    alpha_t = jnp.sum(alpha * onehot, axis=0, keepdims=True)    # (1, TN)
    pt = jnp.exp(logpt)
    one_m_pt = 1.0 - pt

    # focal modulating factor: integer gamma -> VALU multiply chain,
    # non-integer gamma -> clamped pow (EUP).
    g = float(gamma)
    if g >= 0.0 and g == int(g):
        gi = int(g)
        if gi == 0:
            w = jnp.ones_like(one_m_pt)
        else:
            w = one_m_pt
            for _ in range(gi - 1):
                w = w * one_m_pt
    else:
        w = jnp.power(jnp.maximum(one_m_pt, 0.0), g)

    focal = -alpha_t * w * logpt                                # (1, TN)

    # mask out padded samples of the (possibly ragged) last tile
    col = jax.lax.broadcasted_iota(jnp.int32, (1, tn), 1)
    focal = jnp.where(col + i * tn < n_total, focal, 0.0)

    # lane-dense per-tile partial sum: fold TN lanes down to 128 lanes
    partial = focal[:, 0:128]
    for l in range(1, tn // 128):
        partial = partial + focal[:, l * 128:(l + 1) * 128]     # (1, 128)

    # write a full (8,128) block: partials on sublane 0, zeros elsewhere
    row = jax.lax.broadcasted_iota(jnp.int32, (8, 128), 0)
    out_ref[...] = jnp.where(row == 0, partial, 0.0)


@functools.partial(jax.jit, static_argnames=("gamma", "tn"))
def focal_loss_pallas(logits, targets, alpha, gamma=2.0, tn=2048):
    """logits: (N, C) float, targets: (N,) int, alpha: (C,) float (normalized)."""
    N, C = logits.shape

    # tile size: multiple of 128, capped by (padded) N, default 2048 samples.
    tn_eff = max(128, min(int(tn), _round_up(N, 128)))
    tn_eff = _round_up(tn_eff, 128)
    n_pad = _round_up(N, tn_eff)
    grid = n_pad // tn_eff

    # lane-dense layout: classes on sublanes, samples on lanes (+ pad ragged N)
    logits_t = jnp.transpose(logits)                             # (C, N)
    targets_i = targets.astype(jnp.int32).reshape(1, N)          # (1, N)
    if n_pad != N:
        logits_t = jnp.pad(logits_t, ((0, 0), (0, n_pad - N)))
        targets_i = jnp.pad(targets_i, ((0, 0), (0, n_pad - N)))
    alpha2d = alpha.astype(jnp.float32).reshape(C, 1)            # (C, 1)

    kernel = functools.partial(
        _focal_kernel, gamma=float(gamma), n_total=N, tn=tn_eff)

    partials = pl.pallas_call(
        kernel,
        out_shape=jax.ShapeDtypeStruct((grid * 8, 128), jnp.float32),
        grid=(grid,),
        in_specs=[
            pl.BlockSpec((C, tn_eff), lambda i: (0, i)),   # logits tile (lane-dense)
            pl.BlockSpec((1, tn_eff), lambda i: (0, i)),   # targets tile (lane-dense)
            pl.BlockSpec((C, 1), lambda i: (0, 0)),        # alpha (resident)
        ],
        out_specs=pl.BlockSpec((8, 128), lambda i: (i, 0)),  # per-tile partial sums
        compiler_params=pltpu.CompilerParams(
            dimension_semantics=("parallel",)),            # shard grid across TCs (v7x)
    )(logits_t, targets_i, alpha2d)

    return jnp.sum(partials) / jnp.float32(N)


def focal_loss_ref(logits, targets, alpha, gamma=2.0):
    logsm = jax.nn.log_softmax(logits.astype(jnp.float32), axis=-1)
    logpt = jnp.take_along_axis(logsm, targets[:, None].astype(jnp.int32), axis=1)[:, 0]
    pt = jnp.exp(logpt)
    alpha_t = alpha[targets]
    return jnp.mean(-alpha_t * (1.0 - pt) ** gamma * logpt)


if __name__ == "__main__":
    # TODO(synk): the torch module's >2-D reshape path (logit(0)/"premute") is
    # buggy in the original; this wrapper takes pre-flattened (N, C) logits.
    num_class = 4          # channels
    batch, spatial = 2, 16
    N = batch * spatial * spatial      # 512 samples
    gamma = 2.0

    # list-style alpha from __init__, normalized to sum 1 (as the module does)
    alpha = jnp.arange(1, num_class + 1, dtype=jnp.float32)
    alpha = alpha / jnp.sum(alpha)

    key = jax.random.PRNGKey(0)
    k1, k2, k3, k4 = jax.random.split(key, 4)
    logits = jax.random.normal(k1, (N, num_class), dtype=jnp.float32)
    targets = jax.random.randint(k2, (N,), 0, num_class, dtype=jnp.int32)

    loss = focal_loss_pallas(logits, targets, alpha, gamma=gamma)
    jax.block_until_ready(loss)
    ref = focal_loss_ref(logits, targets, alpha, gamma=gamma)
    np.testing.assert_allclose(np.asarray(loss), np.asarray(ref), rtol=1e-5, atol=1e-6)

    # ragged N (not a multiple of 128) exercises the padding + in-kernel mask
    N2 = 300
    logits2 = jax.random.normal(k3, (N2, num_class), dtype=jnp.float32)
    targets2 = jax.random.randint(k4, (N2,), 0, num_class, dtype=jnp.int32)
    loss2 = focal_loss_pallas(logits2, targets2, alpha, gamma=gamma)
    jax.block_until_ready(loss2)
    ref2 = focal_loss_ref(logits2, targets2, alpha, gamma=gamma)
    np.testing.assert_allclose(np.asarray(loss2), np.asarray(ref2), rtol=1e-5, atol=1e-6)

    print("KERNEL_OK")
</pallas_src>

<mosaic_0001>
module attributes {stable_mosaic.version = 11 : i64} {
  func.func @_focal_kernel(%arg0: i32, %arg1: memref<4x512xf32, #tpu.memory_space<vmem>>, %arg2: memref<1x512xi32, #tpu.memory_space<vmem>>, %arg3: memref<4x1xf32, #tpu.memory_space<vmem>>, %arg4: memref<8x128xf32, #tpu.memory_space<vmem>>) attributes {dimension_semantics = [#tpu.dimension_semantics<parallel>], iteration_bounds = array<i64: 1>, scalar_prefetch = 0 : i64, scratch_operands = 0 : i64, tpu.core_type = #tpu.core_type<tc>, window_params = [{transform_indices = @transform_0, window_bounds = array<i64: 4, 512>}, {transform_indices = @transform_1, window_bounds = array<i64: 1, 512>}, {pipeline_mode = #tpu.pipeline_mode<synchronous>, transform_indices = @transform_2, window_bounds = array<i64: 4, 1>}, {transform_indices = @transform_3, window_bounds = array<i64: 8, 128>}]} {
    %c0 = arith.constant 0 : index
    %c0_0 = arith.constant 0 : index
    %0 = vector.load %arg1[%c0, %c0_0] : memref<4x512xf32, #tpu.memory_space<vmem>>, vector<4x512xf32>
    %c0_1 = arith.constant 0 : index
    %c0_2 = arith.constant 0 : index
    %1 = vector.load %arg2[%c0_1, %c0_2] : memref<1x512xi32, #tpu.memory_space<vmem>>, vector<1x512xi32>
    %c0_3 = arith.constant 0 : index
    %c0_4 = arith.constant 0 : index
    %2 = vector.load %arg3[%c0_3, %c0_4] : memref<4x1xf32, #tpu.memory_space<vmem>>, vector<4x1xf32>
    %cst = arith.constant dense<0xFF800000> : vector<512xf32>
    %3 = vector.multi_reduction <maximumf>, %0, %cst [0] : vector<4x512xf32> to vector<512xf32>
    %4 = vector.shape_cast %3 : vector<512xf32> to vector<1x512xf32>
    %5 = vector.broadcast %4 : vector<1x512xf32> to vector<4x512xf32>
    %6 = arith.subf %0, %5 : vector<4x512xf32>
    %7 = math.exp %6 : vector<4x512xf32>
    %cst_5 = arith.constant dense<0.000000e+00> : vector<512xf32>
    %8 = vector.multi_reduction <add>, %7, %cst_5 [0] : vector<4x512xf32> to vector<512xf32>
    %9 = vector.shape_cast %8 : vector<512xf32> to vector<1x512xf32>
    %10 = math.log %9 : vector<1x512xf32>
    %11 = vector.broadcast %10 : vector<1x512xf32> to vector<4x512xf32>
    %12 = arith.subf %6, %11 : vector<4x512xf32>
    %13 = tpu.iota {dimensions = array<i32: 0>} : vector<4x512xi32>
    %14 = vector.broadcast %1 : vector<1x512xi32> to vector<4x512xi32>
    %15 = arith.cmpi eq, %13, %14 : vector<4x512xi32>
    %16 = arith.extui %15 : vector<4x512xi1> to vector<4x512xi32>
    %17 = arith.sitofp %16 : vector<4x512xi32> to vector<4x512xf32>
    %18 = arith.mulf %12, %17 : vector<4x512xf32>
    %cst_6 = arith.constant dense<0.000000e+00> : vector<512xf32>
    %19 = vector.multi_reduction <add>, %18, %cst_6 [0] : vector<4x512xf32> to vector<512xf32>
    %20 = vector.shape_cast %19 : vector<512xf32> to vector<1x512xf32>
    %21 = vector.broadcast %2 : vector<4x1xf32> to vector<4x512xf32>
    %22 = arith.mulf %21, %17 : vector<4x512xf32>
    %cst_7 = arith.constant dense<0.000000e+00> : vector<512xf32>
    %23 = vector.multi_reduction <add>, %22, %cst_7 [0] : vector<4x512xf32> to vector<512xf32>
    %24 = vector.shape_cast %23 : vector<512xf32> to vector<1x512xf32>
    %25 = math.exp %20 : vector<1x512xf32>
    %cst_8 = arith.constant 1.000000e+00 : f32
    %26 = vector.broadcast %cst_8 : f32 to vector<1x512xf32>
    %27 = arith.subf %26, %25 : vector<1x512xf32>
    %28 = arith.mulf %27, %27 : vector<1x512xf32>
    %cst_9 = arith.constant 0.000000e+00 : f32
    %29 = vector.broadcast %cst_9 : f32 to vector<1x512xf32>
    %30 = arith.subf %29, %24 : vector<1x512xf32>
    %31 = arith.mulf %30, %28 : vector<1x512xf32>
    %32 = arith.mulf %31, %20 : vector<1x512xf32>
    %33 = tpu.iota {dimensions = array<i32: 1>} : vector<1x512xi32>
    %c512_i32 = arith.constant 512 : i32
    %34 = arith.muli %arg0, %c512_i32 : i32
    %35 = vector.broadcast %34 : i32 to vector<1x512xi32>
    %36 = arith.addi %33, %35 : vector<1x512xi32>
    %c512_i32_10 = arith.constant 512 : i32
    %37 = vector.broadcast %c512_i32_10 : i32 to vector<1x512xi32>
    %38 = arith.cmpi slt, %36, %37 : vector<1x512xi32>
    %cst_11 = arith.constant 0.000000e+00 : f32
    %39 = vector.broadcast %cst_11 : f32 to vector<1x512xf32>
    %40 = arith.select %38, %32, %39 : vector<1x512xi1>, vector<1x512xf32>
    %41 = vector.extract_strided_slice %40 {offsets = [0, 0], sizes = [1, 128], strides = [1, 1]} : vector<1x512xf32> to vector<1x128xf32>
    %42 = vector.extract_strided_slice %40 {offsets = [0, 128], sizes = [1, 128], strides = [1, 1]} : vector<1x512xf32> to vector<1x128xf32>
    %43 = arith.addf %41, %42 : vector<1x128xf32>
    %44 = vector.extract_strided_slice %40 {offsets = [0, 256], sizes = [1, 128], strides = [1, 1]} : vector<1x512xf32> to vector<1x128xf32>
    %45 = arith.addf %43, %44 : vector<1x128xf32>
    %46 = vector.extract_strided_slice %40 {offsets = [0, 384], sizes = [1, 128], strides = [1, 1]} : vector<1x512xf32> to vector<1x128xf32>
    %47 = arith.addf %45, %46 : vector<1x128xf32>
    %48 = tpu.iota {dimensions = array<i32: 0>} : vector<8x128xi32>
    %c0_i32 = arith.constant 0 : i32
    %49 = vector.broadcast %c0_i32 : i32 to vector<8x128xi32>
    %50 = arith.cmpi eq, %48, %49 : vector<8x128xi32>
    %cst_12 = arith.constant 0.000000e+00 : f32
    %51 = vector.shape_cast %47 : vector<1x128xf32> to vector<1x128xf32>
    %52 = vector.broadcast %51 : vector<1x128xf32> to vector<8x128xf32>
    %53 = vector.broadcast %cst_12 : f32 to vector<8x128xf32>
    %54 = arith.select %50, %52, %53 : vector<8x128xi1>, vector<8x128xf32>
    %c0_13 = arith.constant 0 : index
    %c0_14 = arith.constant 0 : index
    %55 = vector.load %arg4[%c0_13, %c0_14] : memref<8x128xf32, #tpu.memory_space<vmem>>, vector<8x128xf32>
    tpu.vector_store %arg4[%c0_13, %c0_14], %54 {strides = array<i32>} : memref<8x128xf32, #tpu.memory_space<vmem>>, vector<8x128xf32>,
    return
  }
  func.func @transform_0(%arg0: i32) -> (i32, i32) {
    %c0_i32 = arith.constant 0 : i32
    %c0_i32_0 = arith.constant 0 : i32
    return %c0_i32, %arg0 : i32, i32
  }
  func.func @transform_1(%arg0: i32) -> (i32, i32) {
    %c0_i32 = arith.constant 0 : i32
    %c0_i32_0 = arith.constant 0 : i32
    return %c0_i32, %arg0 : i32, i32
  }
  func.func @transform_2(%arg0: i32) -> (i32, i32) {
    %c0_i32 = arith.constant 0 : i32
    %c0_i32_0 = arith.constant 0 : i32
    %c0_i32_1 = arith.constant 0 : i32
    return %c0_i32, %c0_i32_0 : i32, i32
  }
  func.func @transform_3(%arg0: i32) -> (i32, i32) {
    %c0_i32 = arith.constant 0 : i32
    %c0_i32_0 = arith.constant 0 : i32
    return %arg0, %c0_i32 : i32, i32
  }
}

</mosaic_0001>

<bundles_post_ra>
// kernel: focal_loss_pallas.1
= control target key start
LH: loop header
LB: loop body
LE: loop exit
PB: predicated region body
PF: predicated region fallthrough
CT: control target
= control target key end

     0   :  { %8 = vsyncpa [#allocation3], 0  ;;  %s371_s15 = smov [#allocation2]   ;;  %s467_s0 = inlined_call_operand.hbm [shape: f32[4,512], index: 0, kind: input, shape index: {}]   ;;  %s468_s1 = inlined_call_operand.vmem [shape: s32[1,512], index: 1, kind: input, shape index: {}]   ;;  %s469_s2 = inlined_call_operand.vmem [shape: f32[4,1], index: 2, kind: input, shape index: {}]   ;;  %s470_s3 = inlined_call_operand.vmem [shape: f32[8,128], index: 3, kind: output, shape index: {}]  }
   0x1   :  { %s14_s14 = sshll.u32 %s467_s0, 4  ;;  %s16_s16 = sshll.u32 %s371_s15, 4  ;;  %s15_s14 = int_to_ptr.hbm [resolvable:$true] %s14_s14  ;;  %s17_s16 = int_to_ptr.vmem [resolvable:$true] %s16_s16 }
   0x2   :  { %19 = dma.hbm_to_vmem [thread:$0]  %s15_s14, 256, %s17_s16, [#allocation3]  }
   0x3   :  { %369 = dma.done.wait [#allocation3], 256  }
   0x4   :  { %370 = vsyncadd [#allocation3], 4294967040  ;;  %v372_v0 = vmov 0   ;;  %v31_v1 = vld [vmem:[%s469_s2] sm:$0xf]  ;;  %v28_v2 = vld [vmem:[#allocation2] sm:$0xff] }
   0x5   :  { %324 = vset.pattern.permute.xlu0 %v372_v0  ;;  %v29_v3 = vld [vmem:[#allocation2 + $0x8] sm:$0xff]  ;;  %34 = vst [vmem:[#allocation1] ss:$2 sm:$0xff] %v28_v2  ;;  %vm45_vm0 = vcmask 1043456  }
   0x6   :  { %224 = vperm.xlu0 %324, %v31_v1   ;;  %36 = vst [vmem:[#allocation1 + $0x10] ss:$2 sm:$0xff] %v29_v3 }
   0xc   :  { %v37_v4 = vld.sshfl [vmem:[#allocation1] sm:$0xff pattern:$0x75316420]  ;;  %v38_v5 = vld.sshfl [vmem:[#allocation1 + $0x8] sm:$0xff pattern:$0x75316420] }
   0xd   :  { %v39_v6 = vld.sshfl [vmem:[#allocation1 + $0x10] sm:$0xff pattern:$0x75316420]  ;;  %v40_v7 = vld.sshfl [vmem:[#allocation1 + $0x18] sm:$0xff pattern:$0x75316420] }
   0xe   :  { %v46_v8 = vsel %vm45_vm0, %v37_v4, -inf  ;;  %v53_v9 = vsel %vm45_vm0, %v38_v5, -inf  ;;  %v60_v10 = vsel %vm45_vm0, %v39_v6, -inf  ;;  %v67_v11 = vsel %vm45_vm0, %v40_v7, -inf }
   0xf   :  { %v47_v12 = vrot.slane %v46_v8, 4  ;;  %v54_v13 = vrot.slane %v53_v9, 4  ;;  %v61_v14 = vrot.slane %v60_v10, 4  ;;  %v68_v15 = vrot.slane %v67_v11, 4 }
  0x11   :  { %v48_v16 = vmax.f32 %v46_v8, %v47_v12  ;;  %v55_v17 = vmax.f32 %v53_v9, %v54_v13  ;;  %v62_v18 = vmax.f32 %v60_v10, %v61_v14  ;;  %v69_v19 = vmax.f32 %v67_v11, %v68_v15  ;;  %v30_v12 = vld [vmem:[%s468_s1] sm:$0xf] }
  0x13   :  { %v49_v20 = vrot.slane %v48_v16, 2  ;;  %v56_v21 = vrot.slane %v55_v17, 2  ;;  %v63_v22 = vrot.slane %v62_v18, 2  ;;  %v70_v23 = vrot.slane %v69_v19, 2 }
  0x15   :  { %v50_v24 = vmax.f32 %v48_v16, %v49_v20  ;;  %v57_v25 = vmax.f32 %v55_v17, %v56_v21  ;;  %v64_v26 = vmax.f32 %v62_v18, %v63_v22  ;;  %v71_v27 = vmax.f32 %v69_v19, %v70_v23 }
  0x16   :  { %v154_v17 = vperm.slane %v30_v12, 1  ;;  %v156_v18 = vperm.slane %v30_v12, 3  ;;  %v153_v19 = vperm.slane %v30_v12, 0  ;;  %v155_v20 = vperm.slane %v30_v12, 2 }
  0x17   :  { %v51_v28 = vrot.slane %v50_v24, 1  ;;  %v58_v29 = vrot.slane %v57_v25, 1  ;;  %v65_v30 = vrot.slane %v64_v26, 1  ;;  %v72_v31 = vrot.slane %v71_v27, 1 }
  0x18   :  { %v373_v21 = vmov 0.0  }
  0x19   :  { %v52_v32 = vmax.f32 %v50_v24, %v51_v28  ;;  %v59_v33 = vmax.f32 %v57_v25, %v58_v29  ;;  %v66_v34 = vmax.f32 %v64_v26, %v65_v30  ;;  %v73_v35 = vmax.f32 %v71_v27, %v72_v31 }
  0x1b   :  { %v78_v36 = vrot.slane %v59_v33, 4  ;;  %v79_v37 = vrot.slane %v73_v35, 4 }
  0x1d   :  { %v80_v38 = vsel %vm45_vm0, %v52_v32, %v78_v36  ;;  %v81_v39 = vsel %vm45_vm0, %v66_v34, %v79_v37 }
  0x1e   :  { %v406_v40 = vsub.f32 %v28_v2, %v80_v38  ;;  %v408_v41 = vsub.f32 %v29_v3, %v81_v39  ;;  %v151_v2 = vlaneseq }
  0x20   :  { %v86_v42 = vmul.f32 1.442695, %v406_v40  ;;  %v88_v43 = vmul.f32 1.442695, %v408_v41  ;;  %v416_v11 = vshrl.u32 %v151_v2, 7 }
  0x22   :  { %325 = vpow2.f32 %v86_v42  ;;  %vm158_vm1 = vcmp.eq.s32.totalorder %v416_v11, %v154_v17  ;;  %vm160_vm2 = vcmp.eq.s32.totalorder %v416_v11, %v156_v18  ;;  %vm157_vm3 = vcmp.eq.s32.totalorder %v416_v11, %v153_v19 }
  0x23   :  { %327 = vpow2.f32 %v88_v43  ;;  %v423_v22 = vsel %vm158_vm1, 1.0, %v373_v21  ;;  %v426_v25 = vsel %vm160_vm2, 1.0, %v373_v21  ;;  %vm159_vm4 = vcmp.eq.s32.totalorder %v416_v11, %v155_v20 }
  0x24   :  { %v173_v29 = vrot.slane %v423_v22, 4  ;;  %v317_v31 = vsel %vm157_vm3, 1.0, %v373_v21  ;;  %v174_v35 = vrot.slane %v426_v25, 4  ;;  %v319_v36 = vsel %vm159_vm4, 1.0, %v373_v21 }
  0x25   :  { %vm309_vm5 = vcmp.eq.s32.totalorder %v416_v11, 0 }
  0x26   :  { %v175_v39 = vsel %vm45_vm0, %v317_v31, %v173_v29 }
  0x28   :  { %v326_v44 = vpop.eup %325 }
  0x29   :  { %v328_v45 = vpop.eup %327  ;;  %92 = vst [vmem:[#allocation1] ss:$2 sm:$0xff] %v326_v44  ;;  %v176_v44 = vsel %vm45_vm0, %v319_v36, %v174_v35 }
  0x2a   :  { %94 = vst [vmem:[#allocation1 + $0x10] ss:$2 sm:$0xff] %v328_v45 }
  0x30   :  { %v95_v46 = vld.sshfl [vmem:[#allocation1] sm:$0xff pattern:$0x75316420]  ;;  %v96_v47 = vld.sshfl [vmem:[#allocation1 + $0x8] sm:$0xff pattern:$0x75316420] }
  0x31   :  { %v97_v48 = vld.sshfl [vmem:[#allocation1 + $0x10] sm:$0xff pattern:$0x75316420]  ;;  %v98_v49 = vld.sshfl [vmem:[#allocation1 + $0x18] sm:$0xff pattern:$0x75316420] }
  0x32   :  { %v103_v50 = vsel %vm45_vm0, %v95_v46, 0.0  ;;  %v110_v51 = vsel %vm45_vm0, %v96_v47, 0.0  ;;  %v117_v52 = vsel %vm45_vm0, %v97_v48, 0.0  ;;  %v124_v53 = vsel %vm45_vm0, %v98_v49, 0.0 }
  0x33   :  { %v104_v54 = vrot.slane %v103_v50, 4  ;;  %v111_v55 = vrot.slane %v110_v51, 4  ;;  %v118_v56 = vrot.slane %v117_v52, 4  ;;  %v125_v57 = vrot.slane %v124_v53, 4 }
  0x35   :  { %v105_v58 = vadd.f32 %v104_v54, %v103_v50  ;;  %v112_v59 = vadd.f32 %v111_v55, %v110_v51  ;;  %v119_v60 = vadd.f32 %v118_v56, %v117_v52  ;;  %v126_v61 = vadd.f32 %v125_v57, %v124_v53 }
  0x37   :  { %v106_v62 = vrot.slane %v105_v58, 2  ;;  %v113_v63 = vrot.slane %v112_v59, 2  ;;  %v120_v0 = vrot.slane %v119_v60, 2  ;;  %v127_v1 = vrot.slane %v126_v61, 2 }
  0x39   :  { %v107_v3 = vadd.f32 %v106_v62, %v105_v58  ;;  %v114_v4 = vadd.f32 %v113_v63, %v112_v59  ;;  %v121_v5 = vadd.f32 %v120_v0, %v119_v60  ;;  %v128_v6 = vadd.f32 %v127_v1, %v126_v61 }
  0x3b   :  { %v108_v7 = vrot.slane %v107_v3, 1  ;;  %v115_v8 = vrot.slane %v114_v4, 1  ;;  %v122_v9 = vrot.slane %v121_v5, 1  ;;  %v129_v10 = vrot.slane %v128_v6, 1 }
  0x3d   :  { %v109_v13 = vadd.f32 %v108_v7, %v107_v3  ;;  %v116_v14 = vadd.f32 %v115_v8, %v114_v4  ;;  %v123_v15 = vadd.f32 %v122_v9, %v121_v5  ;;  %v130_v16 = vadd.f32 %v129_v10, %v128_v6 }
  0x3f   :  { %329 = vlog2.f32 %v109_v13 }
  0x40   :  { %331 = vlog2.f32 %v116_v14 }
  0x41   :  { %333 = vlog2.f32 %v123_v15 }
  0x42   :  { %335 = vlog2.f32 %v130_v16 }
  0x45   :  { %v330_v23 = vpop.eup %329 }
  0x46   :  { %v332_v24 = vpop.eup %331  ;;  %v132_v27 = vmul.f32 0.6931472, %v330_v23 }
  0x47   :  { %v334_v26 = vpop.eup %333  ;;  %v134_v28 = vmul.f32 0.6931472, %v332_v24 }
  0x48   :  { %v336_v30 = vpop.eup %335  ;;  %v136_v32 = vmul.f32 0.6931472, %v334_v26 }
  0x49   :  { %v138_v33 = vmul.f32 0.6931472, %v336_v30  ;;  %v143_v34 = vrot.slane %v134_v28, 4 }
  0x4b   :  { %v144_v37 = vrot.slane %v138_v33, 4  ;;  %v145_v38 = vsel %vm45_vm0, %v132_v27, %v143_v34 }
  0x4c   :  { %v149_v42 = vsub.f32 %v406_v40, %v145_v38 }
  0x4d   :  { %v146_v43 = vsel %vm45_vm0, %v136_v32, %v144_v37 }
  0x4e   :  { %v150_v45 = vsub.f32 %v408_v41, %v146_v43  ;;  %v179_v46 = vmul.f32 %v175_v39, %v149_v42 }
  0x50   :  { %v180_v47 = vmul.f32 %v176_v44, %v150_v45  ;;  %183 = vst [vmem:[#allocation1] ss:$2 sm:$0xff] %v179_v46 }
  0x52   :  { %185 = vst [vmem:[#allocation1 + $0x10] ss:$2 sm:$0xff] %v180_v47 }
  0x57   :  { %v186_v48 = vld.sshfl [vmem:[#allocation1] sm:$0xff pattern:$0x75316420]  ;;  %v187_v49 = vld.sshfl [vmem:[#allocation1 + $0x8] sm:$0xff pattern:$0x75316420] }
  0x58   :  { %v194_v50 = vsel %vm45_vm0, %v186_v48, 0.0  ;;  %v201_v51 = vsel %vm45_vm0, %v187_v49, 0.0 }
  0x59   :  { %v188_v52 = vld.sshfl [vmem:[#allocation1 + $0x10] sm:$0xff pattern:$0x75316420]  ;;  %v189_v53 = vld.sshfl [vmem:[#allocation1 + $0x18] sm:$0xff pattern:$0x75316420] }
  0x5a   :  { %v195_v54 = vrot.slane %v194_v50, 4  ;;  %v202_v40 = vrot.slane %v201_v51, 4  ;;  %v208_v55 = vsel %vm45_vm0, %v188_v52, 0.0  ;;  %v215_v56 = vsel %vm45_vm0, %v189_v53, 0.0 }
  0x5b   :  { %v209_v57 = vrot.slane %v208_v55, 4  ;;  %v216_v58 = vrot.slane %v215_v56, 4 }
  0x5c   :  { %v196_v41 = vadd.f32 %v195_v54, %v194_v50  ;;  %v203_v59 = vadd.f32 %v202_v40, %v201_v51 }
  0x5d   :  { %v210_v60 = vadd.f32 %v209_v57, %v208_v55  ;;  %v217_v62 = vadd.f32 %v216_v58, %v215_v56 }
  0x5e   :  { %v197_v61 = vrot.slane %v196_v41, 2  ;;  %v204_v63 = vrot.slane %v203_v59, 2 }
  0x5f   :  { %v211_v0 = vrot.slane %v210_v60, 2  ;;  %v218_v2 = vrot.slane %v217_v62, 2 }
  0x60   :  { %v198_v1 = vadd.f32 %v197_v61, %v196_v41  ;;  %v205_v3 = vadd.f32 %v204_v63, %v203_v59 }
  0x61   :  { %v212_v4 = vadd.f32 %v211_v0, %v210_v60  ;;  %v219_v6 = vadd.f32 %v218_v2, %v217_v62 }
  0x62   :  { %v199_v5 = vrot.slane %v198_v1, 1  ;;  %v206_v7 = vrot.slane %v205_v3, 1 }
  0x63   :  { %v213_v8 = vrot.slane %v212_v4, 1  ;;  %v220_v10 = vrot.slane %v219_v6, 1 }
  0x64   :  { %v441_v9 = vadd.f32 %v199_v5, %v198_v1  ;;  %v443_v12 = vadd.f32 %v206_v7, %v205_v3 }
  0x65   :  { %v445_v13 = vadd.f32 %v213_v8, %v212_v4  ;;  %v447_v14 = vadd.f32 %v220_v10, %v219_v6 }
  0x66   :  { %v259_v15 = vmul.f32 1.442695, %v441_v9  ;;  %v261_v16 = vmul.f32 1.442695, %v443_v12 }
  0x67   :  { %v263_v17 = vmul.f32 1.442695, %v445_v13  ;;  %v265_v18 = vmul.f32 1.442695, %v447_v14 }
  0x68   :  { %337 = vpow2.f32 %v259_v15 }
  0x69   :  { %339 = vpow2.f32 %v261_v16 }
  0x6a   :  { %341 = vpow2.f32 %v263_v17 }
  0x6b   :  { %343 = vpow2.f32 %v265_v18 }
  0x6e   :  { %v338_v30 = vpop.eup %337 }
  0x6f   :  { %v267_v46 = vsub.f32 1.0, %v338_v30 }
  0x71   :  { %v271_v57 = vmul.f32 %v267_v46, %v267_v46 }
  0x78   :  { %v225_v19 = vpop.permute.xlu0 %224 }
  0x79   :  { %v227_v20 = vmul.f32 %v317_v31, %v225_v19  ;;  %v228_v21 = vmul.f32 %v423_v22, %v225_v19  ;;  %v229_v23 = vmul.f32 %v319_v36, %v225_v19  ;;  %v230_v24 = vmul.f32 %v426_v25, %v225_v19  ;;  %v340_v31 = vpop.eup %339 }
  0x7a   :  { %v342_v37 = vpop.eup %341  ;;  %v268_v47 = vsub.f32 1.0, %v340_v31 }
  0x7b   :  { %v231_v26 = vsel %vm45_vm0, %v227_v20, 0.0  ;;  %v238_v27 = vsel %vm45_vm0, %v228_v21, 0.0  ;;  %v245_v28 = vsel %vm45_vm0, %v229_v23, 0.0  ;;  %v252_v29 = vsel %vm45_vm0, %v230_v24, 0.0  ;;  %v344_v39 = vpop.eup %343 }
  0x7c   :  { %v232_v32 = vrot.slane %v231_v26, 4  ;;  %v239_v33 = vrot.slane %v238_v27, 4  ;;  %v246_v34 = vrot.slane %v245_v28, 4  ;;  %v253_v35 = vrot.slane %v252_v29, 4 }
  0x7d   :  { %v269_v48 = vsub.f32 1.0, %v342_v37  ;;  %v270_v53 = vsub.f32 1.0, %v344_v39  ;;  %v272_v41 = vmul.f32 %v268_v47, %v268_v47 }
  0x7e   :  { %v233_v22 = vadd.f32 %v232_v32, %v231_v26  ;;  %v240_v36 = vadd.f32 %v239_v33, %v238_v27  ;;  %v247_v38 = vadd.f32 %v246_v34, %v245_v28  ;;  %v254_v25 = vadd.f32 %v253_v35, %v252_v29 }
  0x7f   :  { %v273_v58 = vmul.f32 %v269_v48, %v269_v48  ;;  %v274_v63 = vmul.f32 %v270_v53, %v270_v53 }
  0x80   :  { %v234_v42 = vrot.slane %v233_v22, 2  ;;  %v241_v43 = vrot.slane %v240_v36, 2  ;;  %v248_v44 = vrot.slane %v247_v38, 2  ;;  %v255_v45 = vrot.slane %v254_v25, 2 }
  0x82   :  { %v235_v49 = vadd.f32 %v234_v42, %v233_v22  ;;  %v242_v50 = vadd.f32 %v241_v43, %v240_v36  ;;  %v249_v51 = vadd.f32 %v248_v44, %v247_v38  ;;  %v256_v52 = vadd.f32 %v255_v45, %v254_v25 }
  0x84   :  { %v236_v54 = vrot.slane %v235_v49, 1  ;;  %v243_v40 = vrot.slane %v242_v50, 1  ;;  %v250_v55 = vrot.slane %v249_v51, 1  ;;  %v257_v56 = vrot.slane %v256_v52, 1 }
  0x86   :  { %v237_v59 = vadd.f32 %v236_v54, %v235_v49  ;;  %v244_v60 = vadd.f32 %v243_v40, %v242_v50  ;;  %v251_v61 = vadd.f32 %v250_v55, %v249_v51  ;;  %v258_v62 = vadd.f32 %v257_v56, %v256_v52 }
  0x88   :  { %v275_v0 = vsub.f32 0.0, %v237_v59  ;;  %v276_v1 = vsub.f32 0.0, %v244_v60  ;;  %v277_v2 = vsub.f32 0.0, %v251_v61  ;;  %v278_v3 = vsub.f32 0.0, %v258_v62 }
  0x8a   :  { %v279_v4 = vmul.f32 %v275_v0, %v271_v57  ;;  %v280_v5 = vmul.f32 %v276_v1, %v272_v41  ;;  %v281_v6 = vmul.f32 %v277_v2, %v273_v58  ;;  %v282_v7 = vmul.f32 %v278_v3, %v274_v63 }
  0x8c   :  { %v283_v8 = vmul.f32 %v279_v4, %v441_v9  ;;  %v284_v10 = vmul.f32 %v280_v5, %v443_v12  ;;  %v285_v15 = vmul.f32 %v281_v6, %v445_v13  ;;  %v286_v17 = vmul.f32 %v282_v7, %v447_v14 }
  0x8e   :  { %v306_v16 = vadd.f32 %v284_v10, %v283_v8 }
  0x90   :  { %v307_v18 = vadd.f32 %v306_v16, %v285_v15 }
  0x92   :  { %v308_v19 = vadd.f32 %v307_v18, %v286_v17 }
  0x94   :  { %v310_v20 = vsel %vm309_vm5, %v308_v19, 0.0 }
  0x95   :  { %311 = vst [vmem:[%s470_s3] sm:$0xff] %v310_v20 }
  0x96   :  { %316 = vsyncpa [#allocation3], 1 }

</bundles_post_ra>
